<compile_context>
chip_gen: v5e
topology: v5e:2x2
jax: 0.10.0
libtpu: 0.0.40
codegen_flags: <defaults>
</compile_context>

<pallas_src>
import math

import jax
import jax.numpy as jnp
import numpy as np
from jax.experimental import pallas as pl
from jax.experimental.pallas import tpu as pltpu


# ---------------------------------------------------------------------------
# kernel
# ---------------------------------------------------------------------------
def _mlp_actor_kernel(x_ref, w1_ref, b1_ref, w2_ref, b2_ref, w3_ref, b3_ref,
                      out_ref):
    """Two Linear+Tanh layers followed by a linear `dist` logits head.

    One grid step processes a (tb, obs_dim) batch tile; weights/biases have
    constant index_maps so they are DMA'd once and stay VMEM-resident across
    grid steps. All matmuls accumulate in f32 on the MXU; bias add + tanh run
    in f32 on the VPU/EUP.
    """
    x = x_ref[...].astype(w1_ref.dtype)          # in-kernel cast (VPU), no HBM copy
    h1 = jnp.tanh(
        jnp.dot(x, w1_ref[...], preferred_element_type=jnp.float32)
        + b1_ref[...])
    h2 = jnp.tanh(
        jnp.dot(h1.astype(w2_ref.dtype), w2_ref[...],
                preferred_element_type=jnp.float32)
        + b2_ref[...])
    # TODO(synk): `dist` is an injected nn.Module in PyTorch; modeled here as a
    # linear logits head (Categorical-style). A log-softmax / Gumbel-sampling
    # epilogue could be fused here (EUP slot is idle) for other dist heads.
    out_ref[...] = (
        jnp.dot(h2.astype(w3_ref.dtype), w3_ref[...],
                preferred_element_type=jnp.float32)
        + b3_ref[...])


# ---------------------------------------------------------------------------
# wrapper
# ---------------------------------------------------------------------------
def _round_up(x, m):
    return ((x + m - 1) // m) * m


def prepare_params(params, *, use_bf16=True):
    """One-time parameter preparation (hoist out of the hot path / store in
    the train state). Weights become bf16 MXU operands (f32 accumulation in
    the kernel); biases stay f32."""
    wdt = jnp.bfloat16 if use_bf16 else jnp.float32
    return {
        "w1": params["w1"].astype(wdt),
        "w2": params["w2"].astype(wdt),
        "w3": params["w3"].astype(wdt),
        "b1": params["b1"].reshape(1, -1).astype(jnp.float32),
        "b2": params["b2"].reshape(1, -1).astype(jnp.float32),
        "b3": params["b3"].reshape(1, -1).astype(jnp.float32),
    }


def mlp_actor_forward(obs, prepared, *, tile_batch=2048):
    """obs: (B, obs_dim); prepared: output of `prepare_params`.
    Returns logits of shape (B, num_actions) in f32."""
    w1, b1, w2, b2, w3, b3 = (prepared["w1"], prepared["b1"], prepared["w2"],
                              prepared["b2"], prepared["w3"], prepared["b3"])
    B, obs_dim = obs.shape
    hidden = w1.shape[1]
    num_out = w3.shape[1]

    # Batch tiling: tb multiple of 8 (sublane rule), sized to minimize batch
    # padding; force >= 2 tiles once B allows it so the "parallel" axis can
    # shard across v7x's two TensorCores (free on v5e/v6e).
    tile_batch = max(8, _round_up(tile_batch, 8))
    min_tiles = 2 if B >= 16 else 1
    n_tiles = max(min_tiles, -(-B // tile_batch))
    tb = min(tile_batch, _round_up(-(-B // n_tiles), 8))
    n_tiles = -(-B // tb)
    b_p = n_tiles * tb

    obs_in = obs if b_p == B else jnp.pad(obs, ((0, b_p - B), (0, 0)))

    const = lambda shape: pl.BlockSpec(shape, lambda i: (0, 0))

    # Rough VMEM budget: double-buffered obs/out tiles + resident weights
    # (possibly double-buffered) + activation temporaries, with 2x headroom.
    est = (2 * tb * obs_dim * obs.dtype.itemsize
           + 2 * tb * num_out * 4
           + 2 * (w1.size + w2.size + w3.size) * w1.dtype.itemsize
           + 2 * (b1.size + b2.size + b3.size) * 4
           + 4 * tb * hidden * 4)
    vmem_limit = int(min(64 << 20, max(2 * est, 1 << 20)))

    # NOTE: if `hidden` grows large (>=2048) consider pipeline_mode=
    # pl.Buffered(1) on the weight BlockSpecs to avoid double-buffering the
    # VMEM-resident weights (matters most on v7x's 64 MiB VMEM).
    out = pl.pallas_call(
        _mlp_actor_kernel,
        out_shape=jax.ShapeDtypeStruct((b_p, num_out), jnp.float32),
        grid=(n_tiles,),
        in_specs=[
            pl.BlockSpec((tb, obs_dim), lambda i: (i, 0)),  # obs: tiled batch
            const((obs_dim, hidden)),    # W1 (VMEM-resident)
            const((1, hidden)),          # b1
            const((hidden, hidden)),     # W2
            const((1, hidden)),          # b2
            const((hidden, num_out)),    # W3
            const((1, num_out)),         # b3
        ],
        out_specs=pl.BlockSpec((tb, num_out), lambda i: (i, 0)),
        compiler_params=pltpu.CompilerParams(
            dimension_semantics=("parallel",),
            vmem_limit_bytes=vmem_limit),
    )(obs_in, w1, b1, w2, b2, w3, b3)

    return out if b_p == B else out[:B]


# ---------------------------------------------------------------------------
# params / reference
# ---------------------------------------------------------------------------
def init_params(key, obs_dim, hidden_size, num_actions):
    """orthogonal(gain=sqrt(2)) weights, zero biases
    (mirrors init_ = orthogonal_/constant_(0) in the PyTorch module)."""
    k1, k2, k3 = jax.random.split(key, 3)
    ortho = jax.nn.initializers.orthogonal(scale=math.sqrt(2.0))
    ortho_small = jax.nn.initializers.orthogonal(scale=0.01)  # dist head gain
    return {
        "w1": ortho(k1, (obs_dim, hidden_size), jnp.float32),
        "b1": jnp.zeros((1, hidden_size), jnp.float32),
        "w2": ortho(k2, (hidden_size, hidden_size), jnp.float32),
        "b2": jnp.zeros((1, hidden_size), jnp.float32),
        "w3": ortho_small(k3, (hidden_size, num_actions), jnp.float32),
        "b3": jnp.zeros((1, num_actions), jnp.float32),
    }


def reference_forward(obs, p):
    h1 = jnp.tanh(obs @ p["w1"] + p["b1"])
    h2 = jnp.tanh(h1 @ p["w2"] + p["b2"])
    return h2 @ p["w3"] + p["b3"]


if __name__ == "__main__":
    OBS_DIM = 16
    HIDDEN = 32
    NUM_ACTIONS = 8
    BATCH = 24   # not a tile multiple -> exercises batch padding + 2 grid tiles

    key = jax.random.PRNGKey(0)
    k_obs, k_params = jax.random.split(key)

    obs = jax.random.normal(k_obs, (BATCH, OBS_DIM), dtype=jnp.float32)
    params = init_params(k_params, OBS_DIM, HIDDEN, NUM_ACTIONS)
    ref = reference_forward(obs, params)

    # f32-operand path: exact check.
    p_f32 = prepare_params(params, use_bf16=False)
    logits_f32 = jax.block_until_ready(mlp_actor_forward(obs, p_f32))
    np.testing.assert_allclose(np.asarray(logits_f32), np.asarray(ref),
                               rtol=1e-5, atol=1e-5)

    # bf16-operand path (production default): loose check.
    p_bf16 = prepare_params(params, use_bf16=True)
    logits = jax.block_until_ready(mlp_actor_forward(obs, p_bf16))
    np.testing.assert_allclose(np.asarray(logits), np.asarray(ref),
                               rtol=2e-2, atol=2e-2)
    assert logits.shape == (BATCH, NUM_ACTIONS)

    print("KERNEL_OK")
</pallas_src>

<mosaic_0001>
module attributes {stable_mosaic.version = 11 : i64} {
  func.func @_mlp_actor_kernel(%arg0: i32, %arg1: memref<16x16xf32, #tpu.memory_space<vmem>>, %arg2: memref<16x32xf32, #tpu.memory_space<vmem>>, %arg3: memref<1x32xf32, #tpu.memory_space<vmem>>, %arg4: memref<32x32xf32, #tpu.memory_space<vmem>>, %arg5: memref<1x32xf32, #tpu.memory_space<vmem>>, %arg6: memref<32x8xf32, #tpu.memory_space<vmem>>, %arg7: memref<1x8xf32, #tpu.memory_space<vmem>>, %arg8: memref<16x8xf32, #tpu.memory_space<vmem>>) attributes {dimension_semantics = [#tpu.dimension_semantics<parallel>], iteration_bounds = array<i64: 2>, scalar_prefetch = 0 : i64, scratch_operands = 0 : i64, tpu.core_type = #tpu.core_type<tc>, window_params = [{transform_indices = @transform_0, window_bounds = array<i64: 16, 16>}, {pipeline_mode = #tpu.pipeline_mode<synchronous>, transform_indices = @transform_1, window_bounds = array<i64: 16, 32>}, {pipeline_mode = #tpu.pipeline_mode<synchronous>, transform_indices = @transform_2, window_bounds = array<i64: 1, 32>}, {pipeline_mode = #tpu.pipeline_mode<synchronous>, transform_indices = @transform_3, window_bounds = array<i64: 32, 32>}, {pipeline_mode = #tpu.pipeline_mode<synchronous>, transform_indices = @transform_4, window_bounds = array<i64: 1, 32>}, {pipeline_mode = #tpu.pipeline_mode<synchronous>, transform_indices = @transform_5, window_bounds = array<i64: 32, 8>}, {pipeline_mode = #tpu.pipeline_mode<synchronous>, transform_indices = @transform_6, window_bounds = array<i64: 1, 8>}, {transform_indices = @transform_7, window_bounds = array<i64: 16, 8>}]} {
    %c0 = arith.constant 0 : index
    %c0_0 = arith.constant 0 : index
    %0 = vector.load %arg1[%c0, %c0_0] : memref<16x16xf32, #tpu.memory_space<vmem>>, vector<16x16xf32>
    %c0_1 = arith.constant 0 : index
    %c0_2 = arith.constant 0 : index
    %1 = vector.load %arg2[%c0_1, %c0_2] : memref<16x32xf32, #tpu.memory_space<vmem>>, vector<16x32xf32>
    %cst = arith.constant dense<0.000000e+00> : vector<16x32xf32>
    %2 = tpu.matmul %0, %1, %cst {dimension_numbers = #tpu.dot_dimension_numbers<[1], [0], [0], [1], [0, 0, 1, 1], [], []>} : vector<16x16xf32>, vector<16x32xf32>, vector<16x32xf32> -> vector<16x32xf32>
    %c0_3 = arith.constant 0 : index
    %c0_4 = arith.constant 0 : index
    %3 = vector.load %arg3[%c0_3, %c0_4] : memref<1x32xf32, #tpu.memory_space<vmem>>, vector<1x32xf32>
    %4 = vector.broadcast %3 : vector<1x32xf32> to vector<16x32xf32>
    %5 = arith.addf %2, %4 : vector<16x32xf32>
    %6 = math.tanh %5 : vector<16x32xf32>
    %c0_5 = arith.constant 0 : index
    %c0_6 = arith.constant 0 : index
    %7 = vector.load %arg4[%c0_5, %c0_6] : memref<32x32xf32, #tpu.memory_space<vmem>>, vector<32x32xf32>
    %cst_7 = arith.constant dense<0.000000e+00> : vector<16x32xf32>
    %8 = tpu.matmul %6, %7, %cst_7 {dimension_numbers = #tpu.dot_dimension_numbers<[1], [0], [0], [1], [0, 0, 1, 1], [], []>} : vector<16x32xf32>, vector<32x32xf32>, vector<16x32xf32> -> vector<16x32xf32>
    %c0_8 = arith.constant 0 : index
    %c0_9 = arith.constant 0 : index
    %9 = vector.load %arg5[%c0_8, %c0_9] : memref<1x32xf32, #tpu.memory_space<vmem>>, vector<1x32xf32>
    %10 = vector.broadcast %9 : vector<1x32xf32> to vector<16x32xf32>
    %11 = arith.addf %8, %10 : vector<16x32xf32>
    %12 = math.tanh %11 : vector<16x32xf32>
    %c0_10 = arith.constant 0 : index
    %c0_11 = arith.constant 0 : index
    %13 = vector.load %arg6[%c0_10, %c0_11] : memref<32x8xf32, #tpu.memory_space<vmem>>, vector<32x8xf32>
    %cst_12 = arith.constant dense<0.000000e+00> : vector<16x8xf32>
    %14 = tpu.matmul %12, %13, %cst_12 {dimension_numbers = #tpu.dot_dimension_numbers<[1], [0], [0], [1], [0, 0, 1, 1], [], []>} : vector<16x32xf32>, vector<32x8xf32>, vector<16x8xf32> -> vector<16x8xf32>
    %c0_13 = arith.constant 0 : index
    %c0_14 = arith.constant 0 : index
    %15 = vector.load %arg7[%c0_13, %c0_14] : memref<1x8xf32, #tpu.memory_space<vmem>>, vector<1x8xf32>
    %16 = vector.broadcast %15 : vector<1x8xf32> to vector<16x8xf32>
    %17 = arith.addf %14, %16 : vector<16x8xf32>
    %c0_15 = arith.constant 0 : index
    %c0_16 = arith.constant 0 : index
    %18 = vector.load %arg8[%c0_15, %c0_16] : memref<16x8xf32, #tpu.memory_space<vmem>>, vector<16x8xf32>
    tpu.vector_store %arg8[%c0_15, %c0_16], %17 {strides = array<i32>} : memref<16x8xf32, #tpu.memory_space<vmem>>, vector<16x8xf32>,
    return
  }
  func.func @transform_0(%arg0: i32) -> (i32, i32) {
    %c0_i32 = arith.constant 0 : i32
    %c0_i32_0 = arith.constant 0 : i32
    return %arg0, %c0_i32 : i32, i32
  }
  func.func @transform_1(%arg0: i32) -> (i32, i32) {
    %c0_i32 = arith.constant 0 : i32
    %c0_i32_0 = arith.constant 0 : i32
    %c0_i32_1 = arith.constant 0 : i32
    return %c0_i32, %c0_i32_0 : i32, i32
  }
  func.func @transform_2(%arg0: i32) -> (i32, i32) {
    %c0_i32 = arith.constant 0 : i32
    %c0_i32_0 = arith.constant 0 : i32
    %c0_i32_1 = arith.constant 0 : i32
    return %c0_i32, %c0_i32_0 : i32, i32
  }
  func.func @transform_3(%arg0: i32) -> (i32, i32) {
    %c0_i32 = arith.constant 0 : i32
    %c0_i32_0 = arith.constant 0 : i32
    %c0_i32_1 = arith.constant 0 : i32
    return %c0_i32, %c0_i32_0 : i32, i32
  }
  func.func @transform_4(%arg0: i32) -> (i32, i32) {
    %c0_i32 = arith.constant 0 : i32
    %c0_i32_0 = arith.constant 0 : i32
    %c0_i32_1 = arith.constant 0 : i32
    return %c0_i32, %c0_i32_0 : i32, i32
  }
  func.func @transform_5(%arg0: i32) -> (i32, i32) {
    %c0_i32 = arith.constant 0 : i32
    %c0_i32_0 = arith.constant 0 : i32
    %c0_i32_1 = arith.constant 0 : i32
    return %c0_i32, %c0_i32_0 : i32, i32
  }
  func.func @transform_6(%arg0: i32) -> (i32, i32) {
    %c0_i32 = arith.constant 0 : i32
    %c0_i32_0 = arith.constant 0 : i32
    %c0_i32_1 = arith.constant 0 : i32
    return %c0_i32, %c0_i32_0 : i32, i32
  }
  func.func @transform_7(%arg0: i32) -> (i32, i32) {
    %c0_i32 = arith.constant 0 : i32
    %c0_i32_0 = arith.constant 0 : i32
    return %arg0, %c0_i32 : i32, i32
  }
}

</mosaic_0001>

<bundles_post_ra>
// kernel: tpu_custom_call.1
= control target key start
LH: loop header
LB: loop body
LE: loop exit
PB: predicated region body
PF: predicated region fallthrough
CT: control target
= control target key end

     0   :  { %s546_s24 = smov 0   ;;  %s613_s0 = inlined_call_operand.vmem [shape: f32[32,16], index: 0, kind: input, shape index: {}]   ;;  %s614_s1 = inlined_call_operand.vmem [shape: f32[16,32], index: 1, kind: input, shape index: {}]   ;;  %s615_s2 = inlined_call_operand.vmem [shape: f32[1,32], index: 2, kind: input, shape index: {}]   ;;  %s616_s3 = inlined_call_operand.vmem [shape: f32[32,32], index: 3, kind: input, shape index: {}]   ;;  %s617_s4 = inlined_call_operand.vmem [shape: f32[1,32], index: 4, kind: input, shape index: {}]   ;;  %s618_s5 = inlined_call_operand.vmem [shape: f32[32,8], index: 5, kind: input, shape index: {}]   ;;  %s619_s6 = inlined_call_operand.vmem [shape: f32[1,8], index: 6, kind: input, shape index: {}]   ;;  %s620_s7 = inlined_call_operand.vmem [shape: f32[32,8], index: 7, kind: output, shape index: {}]  }
   0x1 LB: > { %s458_s25 = sadd.s32 4294967295, %s504_s24   ;;  %p462_p0 = scmp.ge.s32.totalorder %s504_s24, 1  ;;  %s504_s24 = sphi %s546_s24, %s17_s24  }
   0x2   : > { %p238_p1 = scmp.lt.s32.totalorder %s504_s24, 3 }
   0x4   : > { %p239_p2 = pnand %p462_p0, %p238_p1 }
   0x5   : > { %s463_s30 = sshll.u32 (!%p239_p2), %s458_s25, 1 }
   0x6   : > { %242 = sbr.rel (%p239_p2) target bundleno = 434 (0x1b2), region = 48  ;;  %p271_p3 = scmp.lt.s32.totalorder (!%p239_p2), %s463_s30, 3 }
   0xb   : > { %v285_v0 = vld [vmem:[%s614_s1 + $0x8] sm:$0xff]  ;;  %v284_v1 = vld [vmem:[%s614_s1] sm:$0xff]  ;;  %s622_s30 = smov (!%p271_p3, %s463_s30), 3  ;;  %vm290_vm0 = vcmask 130048   ;;  %v325_v4 = vld [vmem:[%s616_s3 + $0x18] sm:$0xff]  ;;  %vm330_vm1 = vcmask 261120  }
   0xc   : > { %311 = vmatpush.msra.mxu0 %v285_v0  ;;  %s464_s8 = sshll.u32 %s622_s30, 3  ;;  %349 = vmatpush.msra.mxu1 %v325_v4  ;;  %v324_v5 = vld [vmem:[%s616_s3 + $0x10] sm:$0xff]  ;;  %v323_v6 = vld [vmem:[%s616_s3 + $0x8] sm:$0xff]  ;;  %v322_v7 = vld [vmem:[%s616_s3] sm:$0xff]  ;;  %vm399_vm2 = vcmask 64512  }
   0xd   : > { %s274_s11 = scalar_lea.vmem %s613_s0, %s464_s8  ;;  %475 = vmatpush.msra.mxu3 %v325_v4  ;;  %v487_v8 = vld [vmem:[%s615_s2] ss:$0 sm:$0xff]  ;;  %v365_v15 = vld [vmem:[%s618_s5 + $0x18] sm:$0xff]  ;;  %v364_v16 = vld [vmem:[%s618_s5 + $0x10] sm:$0xff]  ;;  %s280_s16 = scalar_lea.vmem %s620_s7, %s464_s8 }
   0xe   : > { %312 = vmatpush.msra.mxu0 %v284_v1  ;;  %v282_v2 = vld [vmem:[%s274_s11] sm:$0xff]  ;;  %v283_v3 = vld [vmem:[%s274_s11 + $0x8] sm:$0xff]  ;;  %350 = vmatpush.msra.mxu1 %v324_v5 }
   0xf   : > { %467 = vmatmul.msk.f32.vlgmr.msra.gmra.mxu0 %vm290_vm0, %v282_v2  ;;  %476 = vmatpush.msra.mxu3 %v324_v5  ;;  %v363_v17 = vld [vmem:[%s618_s5 + $0x8] sm:$0xff]  ;;  %v362_v18 = vld [vmem:[%s618_s5] sm:$0xff] }
  0x10   : > { %351 = vmatpush.msra.mxu1 %v323_v6  ;;  %388 = vmatpush.msra.mxu2 %v365_v15  ;;  %v488_v19 = vld [vmem:[%s617_s4] ss:$0 sm:$0xff] }
  0x11   : > { %477 = vmatpush.msra.mxu3 %v323_v6  ;;  %v489_v26 = vld [vmem:[%s619_s6] ss:$0 sm:$0xff] }
  0x12   : > { %352 = vmatpush.msra.mxu1 %v322_v7  ;;  %389 = vmatpush.msra.mxu2 %v364_v16 }
  0x13   : > { %478 = vmatpush.msra.mxu3 %v322_v7 }
  0x14   : > { %390 = vmatpush.msra.mxu2 %v363_v17 }
  0x16   : > { %391 = vmatpush.msra.mxu2 %v362_v18 }
  0x17   : > { %468 = vmatmul.msk.f32.gmra.mxu0 %vm290_vm0, %v283_v3 }
  0x8c   : > { %v314_v9 = vpop.f32.mrf.mxu0 }
  0x8d   : > { %v315_v10 = vadd.f32 %v487_v8, %v314_v9 }
  0x8f   : > { %490 = vtanh.f32 %v315_v10 }
  0x94   : > { %v317_v11 = vpop.f32.mrf.mxu0 }
  0x95   : > { %v491_v12 = vpop.eup %490  ;;  %v318_v13 = vadd.f32 %v487_v8, %v317_v11 }
  0x96   : > { %469 = vmatmul.msk.f32.vlgmr.msra.gmra.mxu1 %vm330_vm1, %v491_v12 }
  0x97   : > { %492 = vtanh.f32 %v318_v13 }
  0x9d   : > { %v493_v14 = vpop.eup %492 }
  0x9e   : > { %470 = vmatmul.msk.f32.vlgmr.msra.gmra.mxu3 %vm330_vm1, %v493_v14 }
 0x113   : > { %v354_v20 = vpop.f32.mrf.mxu1 }
 0x114   : > { %v355_v21 = vadd.f32 %v488_v19, %v354_v20 }
 0x116   : > { %494 = vtanh.f32 %v355_v21 }
 0x11c   : > { %v495_v22 = vpop.eup %494 }
 0x11d   : > { %471 = vmatmul.msk.f32.vlgmr.msra.gmra.mxu2 %vm330_vm1, %v495_v22 }
 0x121   : > { %v357_v23 = vpop.f32.mrf.mxu3 }
 0x122   : > { %v358_v24 = vadd.f32 %v488_v19, %v357_v23 }
 0x124   : > { %496 = vtanh.f32 %v358_v24 }
 0x12a   : > { %v497_v25 = vpop.eup %496 }
 0x12b   : > { %472 = vmatmul.msk.f32.gmra.mxu2 %vm330_vm1, %v497_v25 }
 0x1a0   : > { %v393_v27 = vpop.f32.mrf.mxu2 }
 0x1a1   : > { %v394_v28 = vadd.f32 %v489_v26, %v393_v27 }
 0x1a3   : > { %400 = vst.msk [vmem:[%s280_s16] sm:$0xff] %vm399_vm2, %v394_v28 }
 0x1ae   : > { %v396_v29 = vpop.f32.mrf.mxu2 }
 0x1af   : > { %v397_v30 = vadd.f32 %v489_v26, %v396_v29 }
 0x1b1   : > { %401 = vst.msk [vmem:[%s280_s16 + $0x8] sm:$0xff] %vm399_vm2, %v397_v30 }
 0x1b2 PF: > { %s17_s24 = sadd.s32 1, %s504_s24  }
 0x1b3   : > { %p14_p4 = scmp.ge.s32.totalorder %s17_s24, 4  }
 0x1b5   :  { %16 = sbr.rel (!%p14_p4) target bundleno = 1 (0x1), region = 78 }

</bundles_post_ra>
